<compile_context>
chip_gen: v5e
topology: v5e:2x2
jax: 0.10.0
libtpu: 0.0.40
codegen_flags: <defaults>
</compile_context>

<pallas_src>
import functools

import jax
import jax.numpy as jnp
from jax.experimental import pallas as pl
from jax.experimental.pallas import tpu as pltpu

_H1 = 64   # per-branch hidden 1 (packed -> 128)
_H2 = 32   # per-branch hidden 2 (packed -> 64)

# Large-but-FINITE "minus infinity".  Must stay finite: masked lanes still evaluate
# 0 * _NEG in the entropy/log-prob sums, which is only non-NaN because this is finite.
# Do NOT "clean up" to -jnp.inf, and do NOT make it a jnp array (it would be captured
# as a kernel constant, which pallas_call rejects).
_NEG = -1e30


def _round_up(x, m):
    return (x + m - 1) // m * m


def _cdiv(a, b):
    return -(-a // b)


def _actor_critic_kernel(state_ref, act_ref,
                         w1_ref, b1_ref, w2_ref, b2_ref, w3_ref, b3_ref,
                         out_ref, *, action_dim, out_w):
    A = action_dim
    x = state_ref[...].astype(jnp.bfloat16)                              # [TB, S] bf16

    # ---- packed actor|critic MLP: three bf16 MXU matmuls (f32 accumulate) ----
    h1 = jnp.tanh(jnp.dot(x, w1_ref[...],
                          preferred_element_type=jnp.float32) + b1_ref[...])     # [TB,128]
    h2 = jnp.tanh(jnp.dot(h1.astype(jnp.bfloat16), w2_ref[...],
                          preferred_element_type=jnp.float32) + b2_ref[...])     # [TB, 64]
    y = jnp.dot(h2.astype(jnp.bfloat16), w3_ref[...],
                preferred_element_type=jnp.float32) + b3_ref[...]                # [TB, out_w]
    # column layout of y:  [0, A) = actor logits,  [A] = critic value,  rest = 0

    TB = y.shape[0]
    col = jax.lax.broadcasted_iota(jnp.int32, (TB, out_w), 1)            # [TB, out_w]
    is_logit = col < A

    # ---- numerically stable softmax over the logit lanes (narrow width) ----
    logits = jnp.where(is_logit, y, _NEG)
    m = jnp.max(logits, axis=-1, keepdims=True)
    s = logits - m
    e = jnp.where(is_logit, jnp.exp(s), 0.0)
    denom = jnp.sum(e, axis=-1, keepdims=True)
    # Plain divide on purpose: the EUP is saturated by tanh/exp, the VPU has slack,
    # so pushing an approximate reciprocal onto the EUP would be a regression.
    probs = e / denom                                                    # 0 outside [0,A)
    logZ = jnp.log(denom)                                                # [TB, 1]

    # ---- Categorical(probs).log_prob(action) via one-hot select (no log_probs temp) ----
    act = act_ref[...]                                                   # [TB, 1] int32
    onehot = (col == act).astype(jnp.float32)
    logp = jnp.sum(onehot * s, axis=-1, keepdims=True) - logZ            # [TB, 1]

    # ---- Categorical entropy: H = logZ - sum(p * s) ----
    ent = logZ - jnp.sum(probs * s, axis=-1, keepdims=True)              # [TB, 1]

    # ---- critic value: static lane slice (A is a Python int) ----
    val = y[:, A:A + 1]                                                  # [TB, 1]

    # ---- narrow output slab: [probs | logp | val | ent | zeros] ----
    slab = probs
    slab = jnp.where(col == A, logp, slab)
    slab = jnp.where(col == A + 1, val, slab)
    slab = jnp.where(col == A + 2, ent, slab)
    out_ref[...] = slab


def _pack_params(params, out_w):
    """Pack actor+critic weights once; matmul weights are stored in bf16."""
    A = params["aw3"].shape[1]
    bf16, f32 = jnp.bfloat16, jnp.float32

    w1 = jnp.concatenate([params["aw1"], params["cw1"]], axis=1).astype(bf16)   # [S, 128]
    b1 = jnp.concatenate([params["ab1"], params["cb1"]])[None, :].astype(f32)   # [1, 128]

    w2 = jnp.zeros((2 * _H1, 2 * _H2), f32)                                     # [128, 64]
    w2 = w2.at[:_H1, :_H2].set(params["aw2"]).at[_H1:, _H2:].set(params["cw2"])
    w2 = w2.astype(bf16)
    b2 = jnp.concatenate([params["ab2"], params["cb2"]])[None, :].astype(f32)   # [1, 64]

    w3 = jnp.zeros((2 * _H2, out_w), f32)                                       # [64, out_w]
    w3 = w3.at[:_H2, :A].set(params["aw3"]).at[_H2:, A:A + 1].set(params["cw3"])
    w3 = w3.astype(bf16)
    b3 = jnp.zeros((1, out_w), f32)
    b3 = b3.at[0, :A].set(params["ab3"]).at[0, A].set(params["cb3"][0])
    return w1, b1, w2, b2, w3, b3


def actor_critic_evaluate(state, action, params, *, batch_tile=1024):
    """Pallas-fused ActorCritic.evaluate (plus actor probs).

    state:  [B, S] float32
    action: [B]    int32, values in [0, action_dim)
    Returns (action_logprobs [B], state_value [B], dist_entropy [B], action_probs [B, A]).
    """
    B, S = state.shape
    A = params["aw3"].shape[1]
    out_w = _round_up(A + 3, 8)            # narrow, 8-aligned output slab width

    # NOTE: in a training loop, pack once and reuse; repacking per call is cheap here.
    w1, b1, w2, b2, w3, b3 = _pack_params(params, out_w)

    # ---- batch tiling: near-equal 8-aligned tiles, minimal padding ----
    b8 = _round_up(B, 8)
    cap = max(8, min(_round_up(batch_tile, 8), b8))
    n_steps = _cdiv(b8, cap)
    if n_steps == 1 and b8 >= 1024:
        n_steps = 2                        # >=2 grid steps so v7x megacore can split work
    elif n_steps > 2 and n_steps % 2 == 1:
        n_steps += 1                       # even step count -> balanced across 2 TCs
    tb = _round_up(_cdiv(b8, n_steps), 8)
    b_pad = n_steps * tb

    if b_pad != B:
        state = jnp.pad(state, ((0, b_pad - B), (0, 0)))
        action = jnp.pad(action, ((0, b_pad - B),))
    action2d = action.reshape(b_pad, 1).astype(jnp.int32)

    grid = (b_pad // tb,)
    kernel = functools.partial(_actor_critic_kernel, action_dim=A, out_w=out_w)

    in_specs = [
        pl.BlockSpec((tb, S), lambda i: (i, 0)),        # state   : tiled over batch
        pl.BlockSpec((tb, 1), lambda i: (i, 0)),        # action  : tiled over batch
        pl.BlockSpec(w1.shape, lambda i: (0, 0)),       # packed weights / biases:
        pl.BlockSpec(b1.shape, lambda i: (0, 0)),       #   pinned, VMEM-resident
        pl.BlockSpec(w2.shape, lambda i: (0, 0)),
        pl.BlockSpec(b2.shape, lambda i: (0, 0)),
        pl.BlockSpec(w3.shape, lambda i: (0, 0)),
        pl.BlockSpec(b3.shape, lambda i: (0, 0)),
    ]
    out_specs = pl.BlockSpec((tb, out_w), lambda i: (i, 0))
    out_shape = jax.ShapeDtypeStruct((b_pad, out_w), jnp.float32)

    slab = pl.pallas_call(
        kernel,
        grid=grid,
        in_specs=in_specs,
        out_specs=out_specs,
        out_shape=out_shape,
        compiler_params=pltpu.CompilerParams(
            dimension_semantics=("parallel",)),          # megacore sharding on v7x
    )(state, action2d, w1, b1, w2, b2, w3, b3)

    slab = slab[:B]
    probs = slab[:, :A]
    logp = slab[:, A]
    val = slab[:, A + 1]
    ent = slab[:, A + 2]
    return logp, val, ent, probs


def init_params(key, state_dim, action_dim):
    """Deterministic init matching PyTorch nn.Linear default (uniform +-1/sqrt(fan_in))."""
    dims = [(state_dim, _H1), (_H1, _H2), (_H2, action_dim),
            (state_dim, _H1), (_H1, _H2), (_H2, 1)]
    names = [("aw1", "ab1"), ("aw2", "ab2"), ("aw3", "ab3"),
             ("cw1", "cb1"), ("cw2", "cb2"), ("cw3", "cb3")]
    params = {}
    for (wn, bn), (fin, fout) in zip(names, dims):
        key, kw, kb = jax.random.split(key, 3)
        bound = 1.0 / jnp.sqrt(jnp.float32(fin))
        params[wn] = jax.random.uniform(kw, (fin, fout), jnp.float32, -bound, bound)
        params[bn] = jax.random.uniform(kb, (fout,), jnp.float32, -bound, bound)
    return params


def reference_evaluate(state, action, params, *, matmul_dtype=jnp.float32):
    """Pure-JAX reference of the same math.  matmul_dtype=bf16 mimics the kernel's MXU path."""
    def mm(a, w):
        return jnp.dot(a.astype(matmul_dtype), w.astype(matmul_dtype),
                       preferred_element_type=jnp.float32)
    h = jnp.tanh(mm(state, params["aw1"]) + params["ab1"])
    h = jnp.tanh(mm(h, params["aw2"]) + params["ab2"])
    logits = mm(h, params["aw3"]) + params["ab3"]
    log_probs = jax.nn.log_softmax(logits, axis=-1)
    probs = jnp.exp(log_probs)
    logp = jnp.take_along_axis(log_probs, action[:, None], axis=-1)[:, 0]
    ent = -jnp.sum(probs * log_probs, axis=-1)
    c = jnp.tanh(mm(state, params["cw1"]) + params["cb1"])
    c = jnp.tanh(mm(c, params["cw2"]) + params["cb2"])
    val = (mm(c, params["cw3"]) + params["cb3"])[:, 0]
    return logp, val, ent, probs


# TODO(synk): ActorCritic.act()'s Categorical.sample() (stochastic action draw) is
# left to host/JAX-level RNG; the kernel covers the deterministic evaluate math.

if __name__ == "__main__":
    key = jax.random.PRNGKey(0)
    state_dim, action_dim = 16, 4

    kp, ks, ka = jax.random.split(key, 3)
    params = init_params(kp, state_dim, action_dim)

    def check(out, state, action):
        ref_bf = reference_evaluate(state, action, params, matmul_dtype=jnp.bfloat16)
        ref_f32 = reference_evaluate(state, action, params)
        for o, rb, rf in zip(out, ref_bf, ref_f32):
            # Tight parity with the bf16-matmul reference (same MXU math)...
            assert jnp.allclose(o, rb, atol=5e-4), float(jnp.max(jnp.abs(o - rb)))
            # ...and loose parity with the f32 reference (bf16 operands by design).
            assert jnp.allclose(o, rf, atol=3e-2), float(jnp.max(jnp.abs(o - rf)))

    # Small case: single tile, B multiple of 8.
    B1 = 8
    state1 = jax.random.normal(ks, (B1, state_dim), jnp.float32)
    action1 = jax.random.randint(ka, (B1,), 0, action_dim, jnp.int32)
    out1 = actor_critic_evaluate(state1, action1, params)
    jax.block_until_ready(out1)
    check(out1, state1, action1)

    # Larger, ragged case: exercises padding, near-equal tile split, multi-step grid.
    B2 = 50
    ks2, ka2 = jax.random.split(jax.random.PRNGKey(1))
    state2 = jax.random.normal(ks2, (B2, state_dim), jnp.float32)
    action2 = jax.random.randint(ka2, (B2,), 0, action_dim, jnp.int32)
    out2 = actor_critic_evaluate(state2, action2, params, batch_tile=16)
    jax.block_until_ready(out2)
    check(out2, state2, action2)

    print("KERNEL_OK")
</pallas_src>

<mosaic_0001>
module attributes {stable_mosaic.version = 11 : i64} {
  func.func @_actor_critic_kernel(%arg0: i32, %arg1: memref<8x16xf32, #tpu.memory_space<vmem>>, %arg2: memref<8x1xi32, #tpu.memory_space<vmem>>, %arg3: memref<16x128xbf16, #tpu.memory_space<vmem>>, %arg4: memref<1x128xf32, #tpu.memory_space<vmem>>, %arg5: memref<128x64xbf16, #tpu.memory_space<vmem>>, %arg6: memref<1x64xf32, #tpu.memory_space<vmem>>, %arg7: memref<64x8xbf16, #tpu.memory_space<vmem>>, %arg8: memref<1x8xf32, #tpu.memory_space<vmem>>, %arg9: memref<8x8xf32, #tpu.memory_space<vmem>>) attributes {dimension_semantics = [#tpu.dimension_semantics<parallel>], iteration_bounds = array<i64: 1>, scalar_prefetch = 0 : i64, scratch_operands = 0 : i64, tpu.core_type = #tpu.core_type<tc>, window_params = [{transform_indices = @transform_0, window_bounds = array<i64: 8, 16>}, {transform_indices = @transform_1, window_bounds = array<i64: 8, 1>}, {pipeline_mode = #tpu.pipeline_mode<synchronous>, transform_indices = @transform_2, window_bounds = array<i64: 16, 128>}, {pipeline_mode = #tpu.pipeline_mode<synchronous>, transform_indices = @transform_3, window_bounds = array<i64: 1, 128>}, {pipeline_mode = #tpu.pipeline_mode<synchronous>, transform_indices = @transform_4, window_bounds = array<i64: 128, 64>}, {pipeline_mode = #tpu.pipeline_mode<synchronous>, transform_indices = @transform_5, window_bounds = array<i64: 1, 64>}, {pipeline_mode = #tpu.pipeline_mode<synchronous>, transform_indices = @transform_6, window_bounds = array<i64: 64, 8>}, {pipeline_mode = #tpu.pipeline_mode<synchronous>, transform_indices = @transform_7, window_bounds = array<i64: 1, 8>}, {transform_indices = @transform_8, window_bounds = array<i64: 8, 8>}]} {
    %c0 = arith.constant 0 : index
    %c0_0 = arith.constant 0 : index
    %0 = vector.load %arg1[%c0, %c0_0] : memref<8x16xf32, #tpu.memory_space<vmem>>, vector<8x16xf32>
    %1 = arith.truncf %0 : vector<8x16xf32> to vector<8x16xbf16>
    %c0_1 = arith.constant 0 : index
    %c0_2 = arith.constant 0 : index
    %2 = vector.load %arg3[%c0_1, %c0_2] : memref<16x128xbf16, #tpu.memory_space<vmem>>, vector<16x128xbf16>
    %cst = arith.constant dense<0.000000e+00> : vector<8x128xf32>
    %3 = tpu.matmul %1, %2, %cst {dimension_numbers = #tpu.dot_dimension_numbers<[1], [0], [0], [1], [0, 0, 1, 1], [], []>} : vector<8x16xbf16>, vector<16x128xbf16>, vector<8x128xf32> -> vector<8x128xf32>
    %c0_3 = arith.constant 0 : index
    %c0_4 = arith.constant 0 : index
    %4 = vector.load %arg4[%c0_3, %c0_4] : memref<1x128xf32, #tpu.memory_space<vmem>>, vector<1x128xf32>
    %5 = vector.broadcast %4 : vector<1x128xf32> to vector<8x128xf32>
    %6 = arith.addf %3, %5 : vector<8x128xf32>
    %7 = math.tanh %6 : vector<8x128xf32>
    %8 = arith.truncf %7 : vector<8x128xf32> to vector<8x128xbf16>
    %c0_5 = arith.constant 0 : index
    %c0_6 = arith.constant 0 : index
    %9 = vector.load %arg5[%c0_5, %c0_6] : memref<128x64xbf16, #tpu.memory_space<vmem>>, vector<128x64xbf16>
    %cst_7 = arith.constant dense<0.000000e+00> : vector<8x64xf32>
    %10 = tpu.matmul %8, %9, %cst_7 {dimension_numbers = #tpu.dot_dimension_numbers<[1], [0], [0], [1], [0, 0, 1, 1], [], []>} : vector<8x128xbf16>, vector<128x64xbf16>, vector<8x64xf32> -> vector<8x64xf32>
    %c0_8 = arith.constant 0 : index
    %c0_9 = arith.constant 0 : index
    %11 = vector.load %arg6[%c0_8, %c0_9] : memref<1x64xf32, #tpu.memory_space<vmem>>, vector<1x64xf32>
    %12 = vector.broadcast %11 : vector<1x64xf32> to vector<8x64xf32>
    %13 = arith.addf %10, %12 : vector<8x64xf32>
    %14 = math.tanh %13 : vector<8x64xf32>
    %15 = arith.truncf %14 : vector<8x64xf32> to vector<8x64xbf16>
    %c0_10 = arith.constant 0 : index
    %c0_11 = arith.constant 0 : index
    %16 = vector.load %arg7[%c0_10, %c0_11] : memref<64x8xbf16, #tpu.memory_space<vmem>>, vector<64x8xbf16>
    %cst_12 = arith.constant dense<0.000000e+00> : vector<8x8xf32>
    %17 = tpu.matmul %15, %16, %cst_12 {dimension_numbers = #tpu.dot_dimension_numbers<[1], [0], [0], [1], [0, 0, 1, 1], [], []>} : vector<8x64xbf16>, vector<64x8xbf16>, vector<8x8xf32> -> vector<8x8xf32>
    %c0_13 = arith.constant 0 : index
    %c0_14 = arith.constant 0 : index
    %18 = vector.load %arg8[%c0_13, %c0_14] : memref<1x8xf32, #tpu.memory_space<vmem>>, vector<1x8xf32>
    %19 = vector.broadcast %18 : vector<1x8xf32> to vector<8x8xf32>
    %20 = arith.addf %17, %19 : vector<8x8xf32>
    %21 = tpu.iota {dimensions = array<i32: 1>} : vector<8x8xi32>
    %c4_i32 = arith.constant 4 : i32
    %22 = vector.broadcast %c4_i32 : i32 to vector<8x8xi32>
    %23 = arith.cmpi slt, %21, %22 : vector<8x8xi32>
    %cst_15 = arith.constant -1.000000e+30 : f32
    %24 = vector.broadcast %cst_15 : f32 to vector<8x8xf32>
    %25 = arith.select %23, %20, %24 : vector<8x8xi1>, vector<8x8xf32>
    %cst_16 = arith.constant dense<0xFF800000> : vector<8xf32>
    %26 = vector.multi_reduction <maximumf>, %25, %cst_16 [1] : vector<8x8xf32> to vector<8xf32>
    %27 = vector.shape_cast %26 : vector<8xf32> to vector<8x1xf32>
    %28 = vector.broadcast %27 : vector<8x1xf32> to vector<8x8xf32>
    %29 = arith.subf %25, %28 : vector<8x8xf32>
    %30 = math.exp %29 : vector<8x8xf32>
    %cst_17 = arith.constant 0.000000e+00 : f32
    %31 = vector.broadcast %cst_17 : f32 to vector<8x8xf32>
    %32 = arith.select %23, %30, %31 : vector<8x8xi1>, vector<8x8xf32>
    %cst_18 = arith.constant dense<0.000000e+00> : vector<8xf32>
    %33 = vector.multi_reduction <add>, %32, %cst_18 [1] : vector<8x8xf32> to vector<8xf32>
    %34 = vector.shape_cast %33 : vector<8xf32> to vector<8x1xf32>
    %35 = vector.broadcast %34 : vector<8x1xf32> to vector<8x8xf32>
    %36 = arith.divf %32, %35 : vector<8x8xf32>
    %37 = math.log %34 : vector<8x1xf32>
    %c0_19 = arith.constant 0 : index
    %c0_20 = arith.constant 0 : index
    %38 = vector.load %arg2[%c0_19, %c0_20] : memref<8x1xi32, #tpu.memory_space<vmem>>, vector<8x1xi32>
    %39 = vector.broadcast %38 : vector<8x1xi32> to vector<8x8xi32>
    %40 = arith.cmpi eq, %21, %39 : vector<8x8xi32>
    %41 = arith.extui %40 : vector<8x8xi1> to vector<8x8xi32>
    %42 = arith.sitofp %41 : vector<8x8xi32> to vector<8x8xf32>
    %43 = arith.mulf %42, %29 : vector<8x8xf32>
    %cst_21 = arith.constant dense<0.000000e+00> : vector<8xf32>
    %44 = vector.multi_reduction <add>, %43, %cst_21 [1] : vector<8x8xf32> to vector<8xf32>
    %45 = vector.shape_cast %44 : vector<8xf32> to vector<8x1xf32>
    %46 = arith.subf %45, %37 : vector<8x1xf32>
    %47 = arith.mulf %36, %29 : vector<8x8xf32>
    %cst_22 = arith.constant dense<0.000000e+00> : vector<8xf32>
    %48 = vector.multi_reduction <add>, %47, %cst_22 [1] : vector<8x8xf32> to vector<8xf32>
    %49 = vector.shape_cast %48 : vector<8xf32> to vector<8x1xf32>
    %50 = arith.subf %37, %49 : vector<8x1xf32>
    %51 = vector.extract_strided_slice %20 {offsets = [0, 4], sizes = [8, 1], strides = [1, 1]} : vector<8x8xf32> to vector<8x1xf32>
    %c4_i32_23 = arith.constant 4 : i32
    %52 = vector.broadcast %c4_i32_23 : i32 to vector<8x8xi32>
    %53 = arith.cmpi eq, %21, %52 : vector<8x8xi32>
    %54 = vector.shape_cast %46 : vector<8x1xf32> to vector<8x1xf32>
    %55 = vector.broadcast %54 : vector<8x1xf32> to vector<8x8xf32>
    %56 = arith.select %53, %55, %36 : vector<8x8xi1>, vector<8x8xf32>
    %c5_i32 = arith.constant 5 : i32
    %57 = vector.broadcast %c5_i32 : i32 to vector<8x8xi32>
    %58 = arith.cmpi eq, %21, %57 : vector<8x8xi32>
    %59 = vector.shape_cast %51 : vector<8x1xf32> to vector<8x1xf32>
    %60 = vector.broadcast %59 : vector<8x1xf32> to vector<8x8xf32>
    %61 = arith.select %58, %60, %56 : vector<8x8xi1>, vector<8x8xf32>
    %c6_i32 = arith.constant 6 : i32
    %62 = vector.broadcast %c6_i32 : i32 to vector<8x8xi32>
    %63 = arith.cmpi eq, %21, %62 : vector<8x8xi32>
    %64 = vector.shape_cast %50 : vector<8x1xf32> to vector<8x1xf32>
    %65 = vector.broadcast %64 : vector<8x1xf32> to vector<8x8xf32>
    %66 = arith.select %63, %65, %61 : vector<8x8xi1>, vector<8x8xf32>
    %c0_24 = arith.constant 0 : index
    %c0_25 = arith.constant 0 : index
    %67 = vector.load %arg9[%c0_24, %c0_25] : memref<8x8xf32, #tpu.memory_space<vmem>>, vector<8x8xf32>
    tpu.vector_store %arg9[%c0_24, %c0_25], %66 {strides = array<i32>} : memref<8x8xf32, #tpu.memory_space<vmem>>, vector<8x8xf32>,
    return
  }
  func.func @transform_0(%arg0: i32) -> (i32, i32) {
    %c0_i32 = arith.constant 0 : i32
    %c0_i32_0 = arith.constant 0 : i32
    return %arg0, %c0_i32 : i32, i32
  }
  func.func @transform_1(%arg0: i32) -> (i32, i32) {
    %c0_i32 = arith.constant 0 : i32
    %c0_i32_0 = arith.constant 0 : i32
    return %arg0, %c0_i32 : i32, i32
  }
  func.func @transform_2(%arg0: i32) -> (i32, i32) {
    %c0_i32 = arith.constant 0 : i32
    %c0_i32_0 = arith.constant 0 : i32
    %c0_i32_1 = arith.constant 0 : i32
    return %c0_i32, %c0_i32_0 : i32, i32
  }
  func.func @transform_3(%arg0: i32) -> (i32, i32) {
    %c0_i32 = arith.constant 0 : i32
    %c0_i32_0 = arith.constant 0 : i32
    %c0_i32_1 = arith.constant 0 : i32
    return %c0_i32, %c0_i32_0 : i32, i32
  }
  func.func @transform_4(%arg0: i32) -> (i32, i32) {
    %c0_i32 = arith.constant 0 : i32
    %c0_i32_0 = arith.constant 0 : i32
    %c0_i32_1 = arith.constant 0 : i32
    return %c0_i32, %c0_i32_0 : i32, i32
  }
  func.func @transform_5(%arg0: i32) -> (i32, i32) {
    %c0_i32 = arith.constant 0 : i32
    %c0_i32_0 = arith.constant 0 : i32
    %c0_i32_1 = arith.constant 0 : i32
    return %c0_i32, %c0_i32_0 : i32, i32
  }
  func.func @transform_6(%arg0: i32) -> (i32, i32) {
    %c0_i32 = arith.constant 0 : i32
    %c0_i32_0 = arith.constant 0 : i32
    %c0_i32_1 = arith.constant 0 : i32
    return %c0_i32, %c0_i32_0 : i32, i32
  }
  func.func @transform_7(%arg0: i32) -> (i32, i32) {
    %c0_i32 = arith.constant 0 : i32
    %c0_i32_0 = arith.constant 0 : i32
    %c0_i32_1 = arith.constant 0 : i32
    return %c0_i32, %c0_i32_0 : i32, i32
  }
  func.func @transform_8(%arg0: i32) -> (i32, i32) {
    %c0_i32 = arith.constant 0 : i32
    %c0_i32_0 = arith.constant 0 : i32
    return %arg0, %c0_i32 : i32, i32
  }
}

</mosaic_0001>

<bundles_post_ra>
// kernel: tpu_custom_call.1
= control target key start
LH: loop header
LB: loop body
LE: loop exit
PB: predicated region body
PF: predicated region fallthrough
CT: control target
= control target key end

     0   :  { %vm45_vm0 = vcmask 130048   ;;  %s513_s0 = inlined_call_operand.vmem [shape: f32[8,16], index: 0, kind: input, shape index: {}]   ;;  %s514_s1 = inlined_call_operand.vmem [shape: s32[8,1], index: 1, kind: input, shape index: {}]   ;;  %s515_s2 = inlined_call_operand.vmem [shape: bf16[16,128], index: 2, kind: input, shape index: {}]   ;;  %s516_s3 = inlined_call_operand.vmem [shape: f32[1,128], index: 3, kind: input, shape index: {}]   ;;  %s517_s4 = inlined_call_operand.vmem [shape: bf16[128,64], index: 4, kind: input, shape index: {}]   ;;  %s518_s5 = inlined_call_operand.vmem [shape: f32[1,64], index: 5, kind: input, shape index: {}]   ;;  %s519_s6 = inlined_call_operand.vmem [shape: bf16[64,8], index: 6, kind: input, shape index: {}]   ;;  %s520_s7 = inlined_call_operand.vmem [shape: f32[1,8], index: 7, kind: input, shape index: {}]   ;;  %s521_s8 = inlined_call_operand.hbm [shape: f32[8,8], index: 8, kind: output, shape index: {}]  }
   0x1   :  { %v332_v0 = vld [vmem:[%s515_s2] sm:$0xff]  ;;  %v340_v2 = vld [vmem:[%s517_s4 + $0x38] sm:$0xff]  ;;  %v339_v4 = vld [vmem:[%s517_s4 + $0x30] sm:$0xff] }
   0x2   :  { %v31_v1 = vld [vmem:[%s513_s0] sm:$0xff]  ;;  %56 = vmatpush.bf16.msra.mxu0 %v332_v0  ;;  %132 = vmatpush.bf16.msra.mxu1 %v340_v2 }
   0x3   :  { %v32_v3 = vpack.c.bf16 %v31_v1, %v31_v1 }
   0x4   :  { %13 = vsyncpa [#allocation3], 0  ;;  %v338_v5 = vld [vmem:[%s517_s4 + $0x28] sm:$0xff]  ;;  %v337_v6 = vld [vmem:[%s517_s4 + $0x20] sm:$0xff]  ;;  %vm183_vm1 = vcmask 523264   ;;  %v391_v27 = vmov 0   ;;  %v200_v29 = vlaneseq }
   0x5   :  { %281 = vmatmul.msk.bf16.vlgmr.msra.gmra.mxu0 %vm45_vm0, %v32_v3  ;;  %v336_v7 = vld [vmem:[%s517_s4 + $0x18] sm:$0xff]  ;;  %v335_v8 = vld [vmem:[%s517_s4 + $0x10] sm:$0xff]  ;;  %v334_v9 = vld [vmem:[%s517_s4 + $0x8] sm:$0xff]  ;;  %349 = vset.pattern.permute.xlu1 %v391_v27  ;;  %vm204_vm3 = vcmask 64512   ;;  %v392_v38 = vmov 0.0   ;;  %v393_v48 = vmov 4  }
   0x6   :  { %133 = vmatpush.bf16.msra.mxu1 %v339_v4  ;;  %v333_v10 = vld [vmem:[%s517_s4] sm:$0xff]  ;;  %v344_v11 = vld [vmem:[%s519_s6 + $0x18] sm:$0xff]  ;;  %v343_v18 = vld [vmem:[%s519_s6 + $0x10] sm:$0xff]  ;;  %v491_v30 = vand.u32 127, %v200_v29  ;;  %350 = vset.pattern.permute.xlu2 %v393_v48  ;;  %s268_s0 = sshll.u32 %s521_s8, 4  ;;  %s269_s0 = int_to_ptr.hbm [resolvable:$true] %s268_s0 }
   0x7   :  { %191 = vmatpush.bf16.msra.mxu2 %v344_v11  ;;  %v352_v12 = vld [vmem:[%s516_s3] ss:$0 sm:$0xff]  ;;  %v342_v19 = vld [vmem:[%s519_s6 + $0x8] sm:$0xff]  ;;  %351 = vset.pattern.permute.xlu0 %v393_v48 }
   0x8   :  { %v341_v20 = vld [vmem:[%s519_s6] sm:$0xff]  ;;  %vm202_vm2 = vcmp.lt.s32.totalorder %v491_v30, 4  ;;  %vm249_vm9 = vcmp.eq.s32.totalorder %v491_v30, 4  ;;  %vm251_vm10 = vcmp.eq.s32.totalorder %v491_v30, 5  ;;  %vm258_vm11 = vcmp.eq.s32.totalorder %v491_v30, 6 }
   0x9   :  { %v353_v21 = vld [vmem:[%s518_s5] ss:$0 sm:$0xff] }
   0xa   :  { %134 = vmatpush.bf16.msra.mxu1 %v338_v5  ;;  %v232_v28 = vld [vmem:[%s514_s1] sm:$0xff]  ;;  %s394_s1 = smov [#allocation2]  }
   0xb   :  { %192 = vmatpush.bf16.msra.mxu2 %v343_v18  ;;  %234 = vperm.xlu1 %349, %v232_v28   ;;  %v354_v31 = vld [vmem:[%s520_s7] ss:$0 sm:$0xff]  ;;  %s266_s7 = sshll.u32 %s394_s1, 4  ;;  %s267_s7 = int_to_ptr.vmem [resolvable:$true] %s266_s7 }
   0xe   :  { %135 = vmatpush.bf16.msra.mxu1 %v337_v6 }
   0xf   :  { %193 = vmatpush.bf16.msra.mxu2 %v342_v19 }
  0x12   :  { %136 = vmatpush.bf16.msra.mxu1 %v336_v7 }
  0x13   :  { %194 = vmatpush.bf16.msra.mxu2 %v341_v20 }
  0x16   :  { %137 = vmatpush.bf16.msra.mxu1 %v335_v8 }
  0x1a   :  { %138 = vmatpush.bf16.msra.mxu1 %v334_v9 }
  0x1e   :  { %139 = vmatpush.bf16.msra.mxu1 %v333_v10 }
  0x7d   :  { %v235_v37 = vpop.permute.xlu1 %234 }
  0x7e   :  { %vm236_vm4 = vcmp.eq.s32.totalorder %v491_v30, %v235_v37 }
  0x7f   :  { %v331_v39 = vsel %vm236_vm4, 1.0, %v392_v38 }
  0x82   :  { %v58_v13 = vpop.f32.mrf.mxu0 }
  0x83   :  { %v59_v14 = vadd.f32 %v352_v12, %v58_v13 }
  0x85   :  { %355 = vtanh.f32 %v59_v14 }
  0x8a   :  { %v60_v15 = vpop.f32.mrf.mxu0 }
  0x8b   :  { %v356_v16 = vpop.eup %355 }
  0x8c   :  { %v63_v17 = vpack.c.bf16 %v356_v16, %v356_v16 }
  0x8e   :  { %140 = vmatmul.bf16.vlgmr.msra.gmra.mxu1 %v63_v17 }
 0x10b   :  { %v141_v22 = vpop.f32.mrf.mxu1 }
 0x10c   :  { %v142_v23 = vadd.f32 %v353_v21, %v141_v22 }
 0x10e   :  { %357 = vtanh.f32 %v142_v23 }
 0x113   :  { %v143_v24 = vpop.f32.mrf.mxu1 }
 0x114   :  { %v358_v25 = vpop.eup %357 }
 0x115   :  { %v146_v26 = vpack.c.bf16 %v358_v25, %v358_v25 }
 0x117   :  { %330 = vmatmul.msk.bf16.vlgmr.msra.gmra.mxu2 %vm183_vm1, %v146_v26 }
 0x19a   :  { %v196_v32 = vpop.f32.mrf.mxu2 }
 0x19b   :  { %v197_v33 = vadd.f32 %v354_v31, %v196_v32 }
 0x19d   :  { %v203_v34 = vsel %vm202_vm2, %v197_v33, -1e+30 }
 0x19e   :  { %v205_v35 = vsel %vm204_vm3, %v203_v34, -inf }
 0x19f   :  { %206 = vmax.xlane.f32.xlu0 %v205_v35 }
 0x1a2   :  { %v198_v36 = vpop.f32.mrf.mxu2 }
 0x212   :  { %v207_v40 = vpop.xlane.xlu0 %206 }
 0x213   :  { %v208_v41 = vsub.f32 %v203_v34, %v207_v40 }
 0x215   :  { %v209_v42 = vmul.f32 1.442695, %v208_v41  ;;  %v239_v43 = vmul.f32 %v331_v39, %v208_v41 }
 0x217   :  { %359 = vpow2.f32 %v209_v42  ;;  %v240_v44 = vsel %vm204_vm3, %v239_v43, 0.0 }
 0x218   :  { %241 = vadd.xlane.f32.xlu1 %v240_v44 }
 0x21d   :  { %v360_v45 = vpop.eup %359 }
 0x21e   :  { %v211_v46 = vsel %vm202_vm2, %v360_v45, 0.0 }
 0x21f   :  { %v212_v47 = vsel %vm204_vm3, %v211_v46, 0.0 }
 0x220   :  { %213 = vadd.xlane.f32.xlu0 %v212_v47 }
 0x28b   :  { %v242_v61 = vpop.xlane.xlu1 %241 }
 0x293   :  { %v214_v49 = vpop.xlane.xlu0 %213 }
 0x294   :  { %361 = vrcp.f32 %v214_v49  ;;  %v226_v54 = vand.u32 2147483648, %v214_v49  ;;  %v224_v56 = vand.u32 2147483647, %v214_v49  ;;  %vm220_vm6 = vweird.f32 %v214_v49 }
 0x295   :  { %363 = vlog2.f32 %v214_v49 }
 0x296   :  { %v227_v59 = vor.u32 1.1754944e-38, %v226_v54  ;;  %vm225_vm8 = vcmp.eq.f32.partialorder %v224_v56, 8.507059e+37 }
 0x29a   :  { %v362_v50 = vpop.eup %361 }
 0x29b   :  { %v216_v51 = vmul.f32 %v362_v50, %v214_v49  ;;  %v364_v53 = vpop.eup %363  ;;  %vm221_vm5 = vweird.f32 %v362_v50 }
 0x29c   :  { %v231_v58 = vmul.f32 0.6931472, %v364_v53  ;;  %vm222_vm7 = vmor %vm220_vm6, %vm221_vm5 }
 0x29d   :  { %v217_v52 = vsub.f32 1.0, %v216_v51 }
 0x29e   :  { %v243_v0 = vsub.f32 %v242_v61, %v231_v58 }
 0x29f   :  { %v218_v55 = vmul.f32 %v362_v50, %v217_v52 }
 0x2a1   :  { %v219_v57 = vadd.f32 %v362_v50, %v218_v55 }
 0x2a3   :  { %v223_v60 = vsel %vm222_vm7, %v362_v50, %v219_v57 }
 0x2a4   :  { %v228_v62 = vsel %vm225_vm8, %v227_v59, %v223_v60 }
 0x2a5   :  { %v229_v63 = vmul.f32 %v228_v62, %v211_v46 }
 0x2a7   :  { %v244_v1 = vmul.f32 %v229_v63, %v208_v41  ;;  %v250_v2 = vsel %vm249_vm9, %v243_v0, %v229_v63 }
 0x2a9   :  { %v245_v3 = vsel %vm204_vm3, %v244_v1, 0.0 }
 0x2aa   :  { %246 = vadd.xlane.f32.xlu2 %v245_v3 }
 0x2c2   :  { %254 = vperm.xlu2 %350, %v197_v33  }
 0x31d   :  { %v247_v4 = vpop.xlane.xlu2 %246 }
 0x31e   :  { %v248_v5 = vsub.f32 %v231_v58, %v247_v4 }
 0x325   :  { %v255_v6 = vpop.permute.xlu2 %254 }
 0x326   :  { %v257_v7 = vsel %vm251_vm10, %v255_v6, %v250_v2 }
 0x327   :  { %v259_v8 = vsel %vm258_vm11, %v248_v5, %v257_v7 }
 0x328   :  { %260 = vst.msk [vmem:[#allocation2] sm:$0xff] %vm204_vm3, %v259_v8 }
 0x329   :  { %271 = dma.vmem_to_hbm [thread:$0]  %s267_s7, 128, %s269_s0, [#allocation3]  }
 0x32a   :  { %389 = dma.done.wait [#allocation3], 128  }
 0x32b   :  { %390 = vsyncadd [#allocation3], 4294967168 }
 0x32c   :  { %276 = vsyncpa [#allocation3], 1 }

</bundles_post_ra>
